<compile_context>
chip_gen: v6e
topology: v6e:2x2x1
jax: 0.10.0
libtpu: 0.0.40
codegen_flags: <defaults>
</compile_context>

<pallas_src>
import functools

import jax
import jax.numpy as jnp
from jax.experimental import pallas as pl
from jax.experimental.pallas import tpu as pltpu


# ----------------------------------------------------------------------------- tiled path


def _channel_attention_tiled_kernel(x_ref, w1_ref, w2_ref, o_ref, sum_acc, max_acc,
                                    *, inv_n, n_valid_last):
    """Grid = (B, ceil(N/tn)); x_ref is a (C, tn) spatial slab of one batch element."""
    nt = pl.program_id(1)
    n_last = pl.num_programs(1) - 1
    c = sum_acc.shape[0]
    tn = x_ref.shape[-1]

    @pl.when(nt == 0)
    def _init():
        sum_acc[...] = jnp.zeros_like(sum_acc)
        max_acc[...] = jnp.full(max_acc.shape, -jnp.inf, max_acc.dtype)

    def _accumulate(valid_lanes):
        # Lane-wide accumulation: per 128-lane chunk a pure VALU add/max into the
        # (C, 128) accumulators; no cross-lane (XLU) work in the hot loop.
        full_chunks = valid_lanes // 128
        rem = valid_lanes - full_chunks * 128
        for j in range(full_chunks):
            xc = x_ref[:, j * 128:(j + 1) * 128].astype(jnp.float32)   # (C, 128)
            sum_acc[...] += xc
            max_acc[...] = jnp.maximum(max_acc[...], xc)
        if rem:
            # Ragged tail chunk: compile-time-constant lane mask (Pallas padding of
            # out-of-range block lanes is unspecified, so masking is mandatory).
            xc = x_ref[:, full_chunks * 128:(full_chunks + 1) * 128].astype(jnp.float32)
            lane = jax.lax.broadcasted_iota(jnp.int32, (c, 128), 1)
            mask = lane < rem
            sum_acc[...] += jnp.where(mask, xc, 0.0)
            max_acc[...] = jnp.maximum(max_acc[...], jnp.where(mask, xc, -jnp.inf))

    if n_valid_last == tn:
        _accumulate(tn)                 # N divides evenly: no masking anywhere
    else:
        @pl.when(nt != n_last)
        def _full_tile():
            _accumulate(tn)

        @pl.when(nt == n_last)
        def _ragged_tile():
            _accumulate(n_valid_last)

    @pl.when(nt == n_last)
    def _finalize():
        w1 = w1_ref[...].astype(jnp.float32)                          # (Cr, C)
        w2 = w2_ref[...].astype(jnp.float32)                          # (C, Cr)
        # Single cross-lane reduction of the lane-wide accumulators.
        avg = jnp.sum(sum_acc[...], axis=-1, keepdims=True) * inv_n   # (C, 1)
        mxv = jnp.max(max_acc[...], axis=-1, keepdims=True)           # (C, 1)
        # Pack avg into lane 0 and max into lane 1 of a single MXU operand so the
        # first MLP layer is one matmul + one ReLU instead of two.
        lane = jax.lax.broadcasted_iota(jnp.int32, (c, 128), 1)
        packed = jnp.where(lane == 0, avg, jnp.where(lane == 1, mxv, 0.0))   # (C, 128)
        h = jnp.maximum(jnp.dot(w1, packed, preferred_element_type=jnp.float32), 0.0)
        # w2@relu(w1@avg) + w2@relu(w1@max) == w2@(relu(w1@avg) + relu(w1@max))
        hsum = h[:, 0:1] + h[:, 1:2]                                   # (Cr, 1)
        out = jax.nn.sigmoid(
            jnp.dot(w2, jnp.broadcast_to(hsum, (h.shape[0], 128)),
                    preferred_element_type=jnp.float32))               # (C, 128)
        o_ref[...] = out[:, 0:1].astype(o_ref.dtype)


def _pick_spatial_tile(n, c, itemsize, target_bytes=2 << 20, max_lanes=8192):
    """Spatial tile by byte budget: C * tn * itemsize ~= target_bytes, tn % 128 == 0."""
    tn = (target_bytes // max(1, c * itemsize)) // 128 * 128
    tn = max(128, min(tn, max_lanes))
    n_pad = ((n + 127) // 128) * 128
    return min(tn, n_pad)


def _vmem_limit_bytes(*nbytes):
    need = sum(int(b) for b in nbytes) + (4 << 20)   # slack for compiler scratch
    # Never below 32 MiB (>= every generation's default scoped limit), never above
    # 48 MiB (comfortably inside v7x's 64 MiB physical VMEM).
    return int(min(max(need, 32 << 20), 48 << 20))


def _channel_attention_tiled(xf, w1, w2):
    """xf: (B, C, N).  Returns (B, C, 1)."""
    B, C, N = xf.shape
    Cr = w1.shape[0]
    itemsize = xf.dtype.itemsize
    tn = _pick_spatial_tile(N, C, itemsize)
    n_tiles = -(-N // tn)                       # cdiv grid; last tile may be ragged
    n_valid_last = N - (n_tiles - 1) * tn

    kernel = functools.partial(_channel_attention_tiled_kernel,
                               inv_n=1.0 / N, n_valid_last=n_valid_last)

    vmem_limit = _vmem_limit_bytes(
        2 * C * tn * itemsize,                                  # double-buffered x block
        2 * w1.size * w1.dtype.itemsize,                        # w1 (double-buffered)
        2 * w2.size * w2.dtype.itemsize,                        # w2 (double-buffered)
        2 * C * 128 * 4,                                        # accumulators
        2 * C * itemsize,                                       # output block
    )

    return pl.pallas_call(
        kernel,
        out_shape=jax.ShapeDtypeStruct((B, C, 1), xf.dtype),
        grid_spec=pltpu.PrefetchScalarGridSpec(
            num_scalar_prefetch=0,
            grid=(B, n_tiles),
            in_specs=[
                pl.BlockSpec((None, C, tn), lambda b, n: (b, 0, n)),  # x slab (batch squeezed)
                pl.BlockSpec((Cr, C), lambda b, n: (0, 0)),           # w1 (resident)
                pl.BlockSpec((C, Cr), lambda b, n: (0, 0)),           # w2 (resident)
            ],
            out_specs=pl.BlockSpec((None, C, 1), lambda b, n: (b, 0, 0)),
            scratch_shapes=[
                pltpu.VMEM((C, 128), jnp.float32),   # lane-wide running sum
                pltpu.VMEM((C, 128), jnp.float32),   # lane-wide running max
            ],
        ),
        compiler_params=pltpu.CompilerParams(
            dimension_semantics=("parallel", "arbitrary"),
            vmem_limit_bytes=vmem_limit,
        ),
    )(xf, w1, w2)


# ------------------------------------------------------------------- small-N batched path


def _channel_attention_small_n_kernel(x_ref, w1t_ref, w2t_ref, o_ref, *, inv_n):
    """Grid = (ceil(B/tb),); x_ref is a (tb, C, N) block of tb whole batch elements."""
    x = x_ref[...].astype(jnp.float32)                     # (tb, C, N)
    avg = jnp.sum(x, axis=-1) * inv_n                      # (tb, C)
    mxv = jnp.max(x, axis=-1)                              # (tb, C)
    tb = avg.shape[0]

    w1t = w1t_ref[...].astype(jnp.float32)                 # (C, Cr)
    w2t = w2t_ref[...].astype(jnp.float32)                 # (Cr, C)

    # Batch the shared MLP over all tb avg + tb max vectors in one MXU pass.
    v = jnp.concatenate([avg, mxv], axis=0)                # (2*tb, C)
    h = jnp.maximum(jnp.dot(v, w1t, preferred_element_type=jnp.float32), 0.0)  # (2*tb, Cr)
    hsum = h[:tb] + h[tb:]                                 # (tb, Cr)   (linearity fusion)
    out = jax.nn.sigmoid(jnp.dot(hsum, w2t, preferred_element_type=jnp.float32))  # (tb, C)
    o_ref[...] = out.astype(o_ref.dtype)


def _pick_batch_tile(b, c, n, itemsize, target_bytes=2 << 20):
    """Batch-block size: <=64 (MXU column packing), byte-budgeted, multiple of 8 or ==B."""
    per_b = max(1, c * n * itemsize)
    tb = min(64, b, max(1, target_bytes // per_b))
    if tb >= b:
        return b
    tb = max(8, (tb // 8) * 8)   # (tb, C) output block: sublane dim must be 8k or ==B
    return min(tb, b)


def _channel_attention_small_n(xf, w1, w2):
    """xf: (B, C, N) with small N.  Returns (B, C)."""
    B, C, N = xf.shape
    Cr = w1.shape[0]
    itemsize = xf.dtype.itemsize
    tb = _pick_batch_tile(B, C, N, itemsize)
    grid_b = -(-B // tb)

    kernel = functools.partial(_channel_attention_small_n_kernel, inv_n=1.0 / N)

    w1t = w1.T   # (C, Cr) — tiny wrapper-level layout plumbing so in-kernel dots are plain NN
    w2t = w2.T   # (Cr, C)

    vmem_limit = _vmem_limit_bytes(
        2 * tb * C * N * itemsize,
        2 * w1.size * w1.dtype.itemsize,
        2 * w2.size * w2.dtype.itemsize,
        2 * tb * C * itemsize,
    )

    return pl.pallas_call(
        kernel,
        out_shape=jax.ShapeDtypeStruct((B, C), xf.dtype),
        grid_spec=pltpu.PrefetchScalarGridSpec(
            num_scalar_prefetch=0,
            grid=(grid_b,),
            in_specs=[
                pl.BlockSpec((tb, C, N), lambda b: (b, 0, 0)),
                pl.BlockSpec((C, Cr), lambda b: (0, 0)),      # w1.T (resident)
                pl.BlockSpec((Cr, C), lambda b: (0, 0)),      # w2.T (resident)
            ],
            out_specs=pl.BlockSpec((tb, C), lambda b: (b, 0)),
        ),
        compiler_params=pltpu.CompilerParams(
            dimension_semantics=("parallel",),
            vmem_limit_bytes=vmem_limit,
        ),
    )(xf, w1t, w2t)


# --------------------------------------------------------------------------------- wrapper


def channel_attention(x, w1, w2):
    """x: (B, C, H, W); w1: (C//ratio, C); w2: (C, C//ratio).  Returns (B, C, 1, 1)."""
    B, C, H, W = x.shape
    N = H * W
    xf = x.reshape(B, C, N)   # stream in the model dtype; no wrapper upcast

    # Small-N / large-B regime: block several batch elements per grid step and batch
    # the finalize MLP (only when a per-batch block is small enough that a multiple-of-8
    # batch tile comfortably fits VMEM).
    if N <= 512 and C * N * xf.dtype.itemsize <= (512 << 10):
        out2d = _channel_attention_small_n(xf, w1, w2)        # (B, C)
        return out2d.reshape(B, C, 1, 1)

    out3d = _channel_attention_tiled(xf, w1, w2)              # (B, C, 1)
    return out3d.reshape(B, C, 1, 1)


# ------------------------------------------------------------------------------- reference


def ref_forward(x, w1, w2):
    """Pure-JAX reference mirroring the PyTorch ChannelAttention forward."""
    avg = jnp.mean(x, axis=(2, 3))                  # (B, C)
    mx = jnp.max(x, axis=(2, 3))                    # (B, C)

    def shared_mlp(v):                              # v: (B, C)
        h = jnp.maximum(v @ w1.T, 0.0)              # (B, Cr)
        return h @ w2.T                             # (B, C)

    out = jax.nn.sigmoid(shared_mlp(avg) + shared_mlp(mx))
    return out[:, :, None, None]                    # (B, C, 1, 1)


if __name__ == "__main__":
    key = jax.random.PRNGKey(0)
    ratio = 8

    def xavier_normal(k, out_c, in_c, gain):
        std = gain * jnp.sqrt(2.0 / (in_c + out_c))
        return (std * jax.random.normal(k, (out_c, in_c))).astype(jnp.float32)

    configs = [
        # (B, C, H, W, dtype) — exercises both kernel paths
        (2, 32, 16, 16, jnp.float32),    # small-N batched path (N=256)
        (2, 32, 7, 7, jnp.float32),      # small-N batched path, ragged N=49
        (2, 32, 96, 97, jnp.float32),    # tiled path: multi-tile + masked ragged last tile
        (4, 32, 16, 16, jnp.bfloat16),   # bf16 streaming, batched path
    ]

    for (B, C, H, W, dtype) in configs:
        Cr = C // ratio
        kx, k1, k2, key = jax.random.split(key, 4)
        x = jax.random.normal(kx, (B, C, H, W), dtype=jnp.float32).astype(dtype)
        w1 = xavier_normal(k1, Cr, C, gain=1.0)
        w2 = xavier_normal(k2, C, Cr, gain=1.0)

        out = channel_attention(x, w1, w2)
        jax.block_until_ready(out)

        ref = ref_forward(x.astype(jnp.float32), w1, w2)
        assert out.shape == (B, C, 1, 1)
        tol = 1e-2 if dtype == jnp.bfloat16 else 1e-4
        assert jnp.allclose(out.astype(jnp.float32), ref, rtol=tol, atol=tol), \
            f"mismatch for config {(B, C, H, W, dtype)}"

    print("KERNEL_OK")
</pallas_src>

<mosaic_0001>
module attributes {stable_mosaic.version = 11 : i64} {
  func.func @_channel_attention_small_n_kernel(%arg0: i32, %arg1: memref<2x32x256xf32, #tpu.memory_space<vmem>>, %arg2: memref<32x4xf32, #tpu.memory_space<vmem>>, %arg3: memref<4x32xf32, #tpu.memory_space<vmem>>, %arg4: memref<2x32xf32, #tpu.memory_space<vmem>>) attributes {dimension_semantics = [#tpu.dimension_semantics<parallel>], iteration_bounds = array<i64: 1>, scalar_prefetch = 0 : i64, scratch_operands = 0 : i64, tpu.core_type = #tpu.core_type<tc>, window_params = [{transform_indices = @transform_0, window_bounds = array<i64: 2, 32, 256>}, {pipeline_mode = #tpu.pipeline_mode<synchronous>, transform_indices = @transform_1, window_bounds = array<i64: 32, 4>}, {pipeline_mode = #tpu.pipeline_mode<synchronous>, transform_indices = @transform_2, window_bounds = array<i64: 4, 32>}, {transform_indices = @transform_3, window_bounds = array<i64: 2, 32>}]} {
    %c0 = arith.constant 0 : index
    %c0_0 = arith.constant 0 : index
    %c0_1 = arith.constant 0 : index
    %0 = vector.load %arg1[%c0, %c0_0, %c0_1] : memref<2x32x256xf32, #tpu.memory_space<vmem>>, vector<2x32x256xf32>
    %cst = arith.constant dense<0.000000e+00> : vector<2x32xf32>
    %1 = vector.multi_reduction <add>, %0, %cst [2] : vector<2x32x256xf32> to vector<2x32xf32>
    %cst_2 = arith.constant 3.906250e-03 : f32
    %2 = vector.broadcast %cst_2 : f32 to vector<2x32xf32>
    %3 = arith.mulf %1, %2 : vector<2x32xf32>
    %cst_3 = arith.constant dense<0xFF800000> : vector<2x32xf32>
    %4 = vector.multi_reduction <maximumf>, %0, %cst_3 [2] : vector<2x32x256xf32> to vector<2x32xf32>
    %c0_4 = arith.constant 0 : index
    %c0_5 = arith.constant 0 : index
    %5 = vector.load %arg2[%c0_4, %c0_5] : memref<32x4xf32, #tpu.memory_space<vmem>>, vector<32x4xf32>
    %c0_6 = arith.constant 0 : index
    %c0_7 = arith.constant 0 : index
    %6 = vector.load %arg3[%c0_6, %c0_7] : memref<4x32xf32, #tpu.memory_space<vmem>>, vector<4x32xf32>
    %7 = tpu.concatenate %3, %4 in 0 : vector<2x32xf32>, vector<2x32xf32> -> vector<4x32xf32>
    %cst_8 = arith.constant dense<0.000000e+00> : vector<4x4xf32>
    %8 = tpu.matmul %7, %5, %cst_8 {dimension_numbers = #tpu.dot_dimension_numbers<[1], [0], [0], [1], [0, 0, 1, 1], [], []>} : vector<4x32xf32>, vector<32x4xf32>, vector<4x4xf32> -> vector<4x4xf32>
    %cst_9 = arith.constant 0.000000e+00 : f32
    %9 = vector.broadcast %cst_9 : f32 to vector<4x4xf32>
    %10 = arith.maximumf %8, %9 : vector<4x4xf32>
    %11 = vector.extract_strided_slice %10 {offsets = [0, 0], sizes = [2, 4], strides = [1, 1]} : vector<4x4xf32> to vector<2x4xf32>
    %12 = vector.extract_strided_slice %10 {offsets = [2, 0], sizes = [2, 4], strides = [1, 1]} : vector<4x4xf32> to vector<2x4xf32>
    %13 = arith.addf %11, %12 : vector<2x4xf32>
    %cst_10 = arith.constant dense<0.000000e+00> : vector<2x32xf32>
    %14 = tpu.matmul %13, %6, %cst_10 {dimension_numbers = #tpu.dot_dimension_numbers<[1], [0], [0], [1], [0, 0, 1, 1], [], []>} : vector<2x4xf32>, vector<4x32xf32>, vector<2x32xf32> -> vector<2x32xf32>
    %15 = arith.negf %14 : vector<2x32xf32>
    %16 = math.exp %15 : vector<2x32xf32>
    %cst_11 = arith.constant 1.000000e+00 : f32
    %17 = vector.broadcast %cst_11 : f32 to vector<2x32xf32>
    %18 = arith.addf %17, %16 : vector<2x32xf32>
    %19 = arith.divf %17, %18 : vector<2x32xf32>
    %c0_12 = arith.constant 0 : index
    %c0_13 = arith.constant 0 : index
    %20 = vector.load %arg4[%c0_12, %c0_13] : memref<2x32xf32, #tpu.memory_space<vmem>>, vector<2x32xf32>
    tpu.vector_store %arg4[%c0_12, %c0_13], %19 {strides = array<i32>} : memref<2x32xf32, #tpu.memory_space<vmem>>, vector<2x32xf32>,
    return
  }
  func.func @transform_0(%arg0: i32) -> (i32, i32, i32) {
    %c0_i32 = arith.constant 0 : i32
    %c0_i32_0 = arith.constant 0 : i32
    %c0_i32_1 = arith.constant 0 : i32
    return %arg0, %c0_i32, %c0_i32_0 : i32, i32, i32
  }
  func.func @transform_1(%arg0: i32) -> (i32, i32) {
    %c0_i32 = arith.constant 0 : i32
    %c0_i32_0 = arith.constant 0 : i32
    %c0_i32_1 = arith.constant 0 : i32
    return %c0_i32, %c0_i32_0 : i32, i32
  }
  func.func @transform_2(%arg0: i32) -> (i32, i32) {
    %c0_i32 = arith.constant 0 : i32
    %c0_i32_0 = arith.constant 0 : i32
    %c0_i32_1 = arith.constant 0 : i32
    return %c0_i32, %c0_i32_0 : i32, i32
  }
  func.func @transform_3(%arg0: i32) -> (i32, i32) {
    %c0_i32 = arith.constant 0 : i32
    %c0_i32_0 = arith.constant 0 : i32
    return %arg0, %c0_i32 : i32, i32
  }
}

</mosaic_0001>

<bundles_post_ra>
// kernel: tpu_custom_call.1
= control target key start
LH: loop header
LB: loop body
LE: loop exit
PB: predicated region body
PF: predicated region fallthrough
CT: control target
= control target key end

     0   :  { %8 = vsyncpa [#allocation3], 0  ;;  %s536_s0 = inlined_call_operand.hbm [shape: f32[2,32,256], index: 0, kind: input, shape index: {}]   ;;  %s537_s1 = inlined_call_operand.vmem [shape: f32[32,4], index: 1, kind: input, shape index: {}]   ;;  %s538_s2 = inlined_call_operand.vmem [shape: f32[4,32], index: 2, kind: input, shape index: {}]   ;;  %s539_s3 = inlined_call_operand.hbm [shape: f32[2,32], index: 3, kind: output, shape index: {}]  }
   0x1   :  { %9 = vsyncpa [#allocation4], 0  ;;  %s475_s12 = smov [#allocation2]  }
   0x2   :  { %s15_s13 = sshll.u32 %s475_s12, 4  ;;  %s16_s13 = int_to_ptr.vmem [resolvable:$true] %s15_s13 }
   0x3   :  { %s439_s14 = scalar_lea.vmem %s16_s13, 2048  ;;  %p444_p1 = scmp.lt.s32.totalorder %s16_s13, %s16_s13 }
   0x4   :  { %p440_p0 = scmp.ne.s32.totalorder %s16_s13, %s439_s14  ;;  %p445_p2 = scmp.lt.s32.totalorder %s439_s14, %s439_s14 }
   0x6   :  { %p446_p3 = por %p445_p2, %p444_p1 }
   0x8   :  { %p447_p4 = pnand %p446_p3, %p440_p0 }
   0xa   :  { %450 = shalt.err (!%p447_p4)
}
   0xb   :  { %s476_s15 = smov 256   ;;  %s477_s16 = smov 16  }
   0xc   :  { %21 = dma.hbm_to_vmem [thread:$0]  %s536_s0, 2048, %s16_s13, [#allocation3], %s476_s15, %s476_s15, %s477_s16  }
   0xd   :  { %471 = dma.done.wait [#allocation3], 2048  }
   0xe   :  { %472 = vsyncadd [#allocation3], 4294965248  ;;  %v37_v0 = vld [vmem:[#allocation2 + $0x40] sm:$0xff]  ;;  %v38_v1 = vld [vmem:[#allocation2 + $0x48] sm:$0xff]  ;;  %v478_v32 = vmov 0.0   ;;  %vm479_vm0 = vmmov 0   ;;  %v114_v42 = vlaneseq }
   0xf   :  { %v29_v2 = vld [vmem:[#allocation2] sm:$0xff]  ;;  %v57_v3 = vadd.f32 %v38_v1, %v37_v0  ;;  %v30_v4 = vld [vmem:[#allocation2 + $0x8] sm:$0xff]  ;;  %v39_v5 = vld [vmem:[#allocation2 + $0x50] sm:$0xff]  ;;  %v89_v27 = vmax.f32 %v37_v0, %v38_v1  ;;  %405 = vmatprep.subr.mxu0 %v478_v32  ;;  %416 = vmatprep.subr.mxu1 %v478_v32  ;;  %vm125_vm1 = vcmask 130112   ;;  %vm132_vm2 = vcmask 195712   ;;  %s480_s27 = smov [#allocation5]  }
  0x10   :  { %v40_v6 = vld [vmem:[#allocation2 + $0x58] sm:$0xff]  ;;  %v45_v7 = vadd.f32 %v30_v4, %v29_v2  ;;  %v31_v8 = vld [vmem:[#allocation2 + $0x10] sm:$0xff]  ;;  %v41_v12 = vld [vmem:[#allocation2 + $0x60] sm:$0xff]  ;;  %v77_v25 = vmax.f32 %v29_v2, %v30_v4  ;;  %413 = vmatprep.mubr.msk.f32.mxu0 %vm479_vm0, %v478_v32  ;;  %418 = vmatprep.mubr.msk.f32.mxu1 %vm479_vm0, %v478_v32  ;;  %v115_v45 = vand.u32 127, %v114_v42  ;;  %v117_v47 = vshrl.u32 %v114_v42, 7  ;;  %s385_s28 = sshll.u32 %s480_s27, 4  ;;  %s386_s28 = int_to_ptr.vmem [resolvable:$true] %s385_s28 }
  0x11   :  { %v32_v9 = vld [vmem:[#allocation2 + $0x18] sm:$0xff]  ;;  %58 = vadd.xlane.f32.xlu1 %v57_v3  ;;  %v60_v10 = vadd.f32 %v40_v6, %v39_v5  ;;  %v42_v13 = vld [vmem:[#allocation2 + $0x68] sm:$0xff]  ;;  %v33_v14 = vld [vmem:[#allocation2 + $0x20] sm:$0xff]  ;;  %v92_v26 = vmax.f32 %v39_v5, %v40_v6  ;;  %vm139_vm3 = vcmask 261312   ;;  %vm160_vm4 = vcmask 1041409   ;;  %p456_p6 = scmp.lt.s32.totalorder %s386_s28, %s386_s28 }
  0x12   :  { %46 = vadd.xlane.f32.xlu0 %v45_v7  ;;  %v48_v11 = vadd.f32 %v32_v9, %v31_v8  ;;  %v34_v15 = vld [vmem:[#allocation2 + $0x28] sm:$0xff]  ;;  %v63_v16 = vadd.f32 %v42_v13, %v41_v12  ;;  %v43_v18 = vld [vmem:[#allocation2 + $0x70] sm:$0xff]  ;;  %v44_v19 = vld [vmem:[#allocation2 + $0x78] sm:$0xff]  ;;  %v80_v24 = vmax.f32 %v31_v8, %v32_v9  ;;  %v95_v28 = vmax.f32 %v41_v12, %v42_v13 }
  0x13   :  { %v51_v17 = vadd.f32 %v34_v15, %v33_v14  ;;  %v35_v20 = vld [vmem:[#allocation2 + $0x30] sm:$0xff]  ;;  %v36_v21 = vld [vmem:[#allocation2 + $0x38] sm:$0xff]  ;;  %v66_v22 = vadd.f32 %v44_v19, %v43_v18  ;;  %v83_v29 = vmax.f32 %v33_v14, %v34_v15  ;;  %v98_v30 = vmax.f32 %v43_v18, %v44_v19  ;;  %v102_v35 = vld [vmem:[%s537_s1 + $0x8] sm:$0xff] }
  0x14   :  { %v54_v23 = vadd.f32 %v36_v21, %v35_v20  ;;  %v86_v31 = vmax.f32 %v35_v20, %v36_v21  ;;  %v104_v33 = vld [vmem:[%s537_s1 + $0x18] sm:$0xff]  ;;  %v103_v34 = vld [vmem:[%s537_s1 + $0x10] sm:$0xff]  ;;  %v101_v36 = vld [vmem:[%s537_s1] sm:$0xff]  ;;  %v120_v48 = vadd.s32 4294967288, %v115_v45  ;;  %v127_v49 = vadd.s32 4294967280, %v115_v45 }
  0x15   :  { %61 = vadd.xlane.f32.xlu1 %v60_v10  ;;  %406 = vmatpush3.msra.mxu0 %v104_v33  ;;  %v134_v51 = vadd.s32 4294967272, %v115_v45  ;;  %v118_v53 = vsub.s32 %v115_v45, %v117_v47  ;;  %vm209_vm5 = vcmask 1043459   ;;  %vm212_vm6 = vcmask 1041408  }
  0x16   :  { %49 = vadd.xlane.f32.xlu0 %v48_v11  ;;  %407 = vmatprep.subr.mxu0 %v478_v32  ;;  %v123_v54 = vsub.s32 %v120_v48, %v117_v47  ;;  %v130_v56 = vsub.s32 %v127_v49, %v117_v47  ;;  %vm214_vm7 = vcmask 261120   ;;  %vm297_vm8 = vcmask 1043456  }
  0x17   :  { %408 = vmatpush3.msra.mxu0 %v103_v34  ;;  %v137_v63 = vsub.s32 %v134_v51, %v117_v47  ;;  %vm293_vm9 = vcmask 31744   ;;  %vm377_vm10 = vcmask 254976  }
  0x18   :  { %409 = vmatprep.subr.mxu0 %v478_v32 }
  0x19   :  { %64 = vadd.xlane.f32.xlu1 %v63_v16  ;;  %410 = vmatpush3.msra.mxu0 %v102_v35 }
  0x1a   :  { %52 = vadd.xlane.f32.xlu0 %v51_v17  ;;  %411 = vmatprep.subr.mxu0 %v478_v32 }
  0x1b   :  { %412 = vmatpush3.msra.mxu0 %v101_v36 }
  0x1d   :  { %67 = vadd.xlane.f32.xlu1 %v66_v22 }
  0x1e   :  { %55 = vadd.xlane.f32.xlu0 %v54_v23 }
  0x21   :  { %81 = vmax.xlane.f32.xlu1 %v80_v24 }
  0x22   :  { %78 = vmax.xlane.f32.xlu0 %v77_v25 }
  0x25   :  { %93 = vmax.xlane.f32.xlu1 %v92_v26 }
  0x26   :  { %90 = vmax.xlane.f32.xlu0 %v89_v27 }
  0x29   :  { %96 = vmax.xlane.f32.xlu1 %v95_v28 }
  0x2a   :  { %84 = vmax.xlane.f32.xlu0 %v83_v29 }
  0x2d   :  { %99 = vmax.xlane.f32.xlu1 %v98_v30 }
  0x2e   :  { %87 = vmax.xlane.f32.xlu0 %v86_v31 }
  0x9a   :  { %v59_v37 = vpop.xlane.xlu1 %58 }
  0x9b   :  { %v47_v38 = vpop.xlane.xlu0 %46  ;;  %v73_v57 = vmul.f32 0.00390625, %v59_v37 }
  0x9c   :  { %v69_v58 = vmul.f32 0.00390625, %v47_v38  ;;  %v105_v38 = vld [vmem:[%s538_s2] sm:$0xf]  ;;  %s451_s2 = scalar_lea.vmem %s386_s28, 32 }
  0x9d   :  { %v144_v4 = vrot.slane %v73_v57, %v118_v53  ;;  %417 = vmatpush3.msk.msra.mxu1 %vm297_vm8, %v105_v38  ;;  %p452_p5 = scmp.ne.s32.totalorder %s386_s28, %s451_s2  ;;  %p457_p7 = scmp.lt.s32.totalorder %s451_s2, %s451_s2 }
  0x9e   :  { %v62_v39 = vpop.xlane.xlu1 %61  ;;  %v119_v5 = vrot.slane %v69_v58, %v118_v53 }
  0x9f   :  { %v50_v40 = vpop.xlane.xlu0 %49  ;;  %v74_v55 = vmul.f32 0.00390625, %v62_v39  ;;  %p458_p8 = por %p457_p7, %p456_p6 }
  0xa0   :  { %v70_v59 = vmul.f32 0.00390625, %v50_v40 }
  0xa1   :  { %v148_v3 = vrot.slane %v74_v55, %v123_v54  ;;  %p459_p9 = pnand %p458_p8, %p452_p5 }
  0xa2   :  { %v65_v41 = vpop.xlane.xlu1 %64  ;;  %v124_v6 = vrot.slane %v70_v59, %v123_v54 }
  0xa3   :  { %v53_v43 = vpop.xlane.xlu0 %52  ;;  %v75_v60 = vmul.f32 0.00390625, %v65_v41  ;;  %v149_v18 = vsel %vm125_vm1, %v148_v3, %v144_v4 }
  0xa4   :  { %v71_v62 = vmul.f32 0.00390625, %v53_v43  ;;  %v126_v20 = vsel %vm125_vm1, %v124_v6, %v119_v5 }
  0xa5   :  { %v153_v7 = vrot.slane %v75_v60, %v130_v56 }
  0xa6   :  { %v68_v44 = vpop.xlane.xlu1 %67  ;;  %v131_v9 = vrot.slane %v71_v62, %v130_v56 }
  0xa7   :  { %v56_v46 = vpop.xlane.xlu0 %55  ;;  %v76_v0 = vmul.f32 0.00390625, %v68_v44  ;;  %v154_v21 = vsel %vm132_vm2, %v153_v7, %v149_v18 }
  0xa8   :  { %v72_v2 = vmul.f32 0.00390625, %v56_v46  ;;  %v133_v23 = vsel %vm132_vm2, %v131_v9, %v126_v20 }
  0xa9   :  { %v158_v10 = vrot.slane %v76_v0, %v137_v63 }
  0xaa   :  { %v82_v50 = vpop.xlane.xlu1 %81  ;;  %v138_v14 = vrot.slane %v72_v2, %v137_v63 }
  0xab   :  { %v79_v52 = vpop.xlane.xlu0 %78  ;;  %v178_v15 = vrot.slane %v82_v50, %v123_v54  ;;  %v159_v24 = vsel %vm139_vm3, %v158_v10, %v154_v21 }
  0xac   :  { %v174_v16 = vrot.slane %v79_v52, %v118_v53  ;;  %v140_v28 = vsel %vm139_vm3, %v138_v14, %v133_v23 }
  0xad   :  { %v161_v35 = vsel %vm160_vm4, %v159_v24, %v140_v28 }
  0xae   :  { %v94_v61 = vpop.xlane.xlu1 %93  ;;  %v179_v29 = vsel %vm125_vm1, %v178_v15, %v174_v16 }
  0xaf   :  { %v91_v1 = vpop.xlane.xlu0 %90  ;;  %v197_v11 = vrot.slane %v94_v61, %v123_v54 }
  0xb0   :  { %v193_v12 = vrot.slane %v91_v1, %v118_v53 }
  0xb2   :  { %v97_v8 = vpop.xlane.xlu1 %96  ;;  %v198_v25 = vsel %vm125_vm1, %v197_v11, %v193_v12 }
  0xb3   :  { %v85_v13 = vpop.xlane.xlu0 %84  ;;  %v202_v17 = vrot.slane %v97_v8, %v130_v56 }
  0xb4   :  { %v183_v19 = vrot.slane %v85_v13, %v130_v56 }
  0xb5   :  { %v203_v30 = vsel %vm132_vm2, %v202_v17, %v198_v25 }
  0xb6   :  { %v100_v22 = vpop.xlane.xlu1 %99  ;;  %v184_v32 = vsel %vm132_vm2, %v183_v19, %v179_v29 }
  0xb7   :  { %v207_v26 = vrot.slane %v100_v22, %v137_v63  ;;  %v88_v27 = vpop.xlane.xlu0 %87 }
  0xb8   :  { %v188_v31 = vrot.slane %v88_v27, %v137_v63 }
  0xb9   :  { %v208_v33 = vsel %vm139_vm3, %v207_v26, %v203_v30 }
  0xba   :  { %v189_v34 = vsel %vm139_vm3, %v188_v31, %v184_v32 }
  0xbb   :  { %v210_v36 = vsel %vm209_vm5, %v208_v33, %v189_v34 }
  0xbc   :  { %v213_v37 = vsel %vm212_vm6, %v161_v35, %v210_v36 }
  0xbd   :  { %414 = vmatmul.mubr.msk.f32.vlgmr.msra.gmra.mxu0 %vm214_vm7, %v213_v37 }
 0x17d   :  { %v284_v39 = vpop.f32.mrf.mxu0 }
 0x17e   :  { %v288_v40 = vmax.f32 %v284_v39, 0.0 }
 0x17f   :  { %v415_v41 = vpop.f32.mrf.mxu0 }
 0x180   :  { %v290_v42 = vrot.slane %v288_v40, 2 }
 0x182   :  { %v292_v43 = vadd.f32 %v290_v42, %v288_v40 }
 0x184   :  { %419 = vmatmul.mubr.msk.f32.vlgmr.msra.gmra.mxu1 %vm293_vm9, %v292_v43 }
 0x244   :  { %v367_v44 = vpop.f32.mrf.mxu1 }
 0x245   :  { %v397_v45 = vmul.f32 -1.442695, %v367_v44 }
 0x246   :  { %v420_v46 = vpop.f32.mrf.mxu1 }
 0x247   :  { %427 = vpow2.f32 %v397_v45 }
 0x254   :  { %v428_v47 = vpop.eup %427 }
 0x255   :  { %v374_v48 = vadd.f32 1.0, %v428_v47 }
 0x257   :  { %429 = vrcp.f32 %v374_v48 }
 0x264   :  { %v430_v49 = vpop.eup %429 }
 0x265   :  { %378 = vst.msk [vmem:[#allocation5] sm:$0x3] %vm377_vm10, %v430_v49 }
 0x266   :  { %462 = shalt.err (!%p459_p9)
}
 0x267   :  { %388 = dma.vmem_to_hbm [thread:$0]  %s386_s28, 32, %s539_s3, [#allocation4]  }
 0x268   :  { %473 = dma.done.wait [#allocation4], 32  }
 0x269   :  { %474 = vsyncadd [#allocation4], 4294967264 }
 0x26a   :  { %392 = vsyncpa [#allocation3], 1 }
 0x26b   :  { %393 = vsyncpa [#allocation4], 1 }

</bundles_post_ra>
